<compile_context>
chip_gen: v7x
topology: tpu7x:2x2x1
jax: 0.10.0
libtpu: 0.0.40
codegen_flags: <defaults>
</compile_context>

<pallas_src>
import functools
import math

import jax
import jax.numpy as jnp
from jax.experimental import pallas as pl
from jax.experimental.pallas import tpu as pltpu


def _round_up(x, m):
    return (x + m - 1) // m * m


# ---------------------------------------------------------------------------
# Pallas kernel 1: 'same'-padded stride-1 conv as a single fused matmul / image
# ---------------------------------------------------------------------------
def _conv_kernel(x_ref, w_ref, b_ref, o_ref, *, taps, M, precision):
    """x_ref: (1, Ci_p, Lp) flattened zero-padded image (lane dim = flat H*W)
       w_ref: (Co_p, kH*kW*Ci_p)   b_ref: (Co_p, 1)   o_ref: (1, Co_p, M)."""
    # In-kernel im2col: each tap is a static lane-offset slice of the flat image.
    cols = [x_ref[0, :, off:off + M] for off in taps]         # each (Ci_p, M)
    patch = jnp.concatenate(cols, axis=0)                     # (kH*kW*Ci_p, M)
    acc = jnp.dot(w_ref[...], patch,
                  preferred_element_type=jnp.float32, precision=precision)
    o_ref[0] = acc + b_ref[...]                               # bias folded once


def conv2d_same_pallas(x, w, b, *, dilation=(1, 1),
                       precision=jax.lax.Precision.HIGHEST):
    """x: (N, Ci, H, W); w: (Co, Ci, kH, kW); b: (Co,). PyTorch Conv2d(padding='same')."""
    N, Ci, H, W = x.shape
    Co, Ci_w, kH, kW = w.shape
    assert Ci_w == Ci
    dH, dW = int(dilation[0]), int(dilation[1])
    assert kH % 2 == 1 and kW % 2 == 1, "odd kernels only (symmetric 'same' pad)"
    ph, pw = (kH - 1) * dH // 2, (kW - 1) * dW // 2
    Hp, Wp = H + 2 * ph, W + 2 * pw

    Ci_p = _round_up(Ci, 8)                 # fill sublanes
    Co_p = _round_up(Co, 8)
    M = _round_up(H * Wp, 128)              # lane-dense output slab
    max_off = (kH - 1) * dH * Wp + (kW - 1) * dW
    Lp = _round_up(max_off + M, 128)

    # --- layout glue (zero pad + flatten + channel/lane pad); fused by XLA ---
    xf = jnp.pad(x.astype(jnp.float32), ((0, 0), (0, 0), (ph, ph), (pw, pw)))
    xf = xf.reshape(N, Ci, Hp * Wp)
    xf = jnp.pad(xf, ((0, 0), (0, Ci_p - Ci), (0, Lp - Hp * Wp)))

    wk = jnp.pad(w.astype(jnp.float32),
                 ((0, Co_p - Co), (0, Ci_p - Ci), (0, 0), (0, 0)))
    wk = jnp.transpose(wk, (0, 2, 3, 1)).reshape(Co_p, kH * kW * Ci_p)
    bk = jnp.pad(b.astype(jnp.float32), (0, Co_p - Co)).reshape(Co_p, 1)

    taps = tuple(i * dH * Wp + j * dW for i in range(kH) for j in range(kW))

    cost = pl.CostEstimate(
        flops=2 * N * H * W * Co * Ci * kH * kW,
        transcendentals=0,
        bytes_accessed=4 * (xf.size + wk.size + N * Co_p * M))

    # NOTE: for production-sized H*W, tile the flat lane dim (row blocks + halo)
    # so the per-program blocks stay within v7x's 64 MiB VMEM.
    out = pl.pallas_call(
        functools.partial(_conv_kernel, taps=taps, M=M, precision=precision),
        out_shape=jax.ShapeDtypeStruct((N, Co_p, M), jnp.float32),
        grid=(N,),
        in_specs=[
            pl.BlockSpec((1, Ci_p, Lp), lambda n: (n, 0, 0)),
            pl.BlockSpec((Co_p, kH * kW * Ci_p), lambda n: (0, 0)),
            pl.BlockSpec((Co_p, 1), lambda n: (0, 0)),
        ],
        out_specs=pl.BlockSpec((1, Co_p, M), lambda n: (n, 0, 0)),
        compiler_params=pltpu.CompilerParams(dimension_semantics=("parallel",)),
        cost_estimate=cost,
    )(xf, wk, bk)

    # drop channel/lane padding and the horizontal-pad garbage columns
    out = out[:, :Co, :H * Wp].reshape(N, Co, H, Wp)[:, :, :, :W]
    return out


# ---------------------------------------------------------------------------
# Pallas kernels 2/3: fused per-channel scale/shift (+ leaky_relu / + residual)
# ---------------------------------------------------------------------------
def _bn_act_kernel(y_ref, s_ref, t_ref, o_ref, *, alpha):
    y = y_ref[0] * s_ref[...] + t_ref[...]
    o_ref[0] = jnp.where(y >= 0, y, alpha * y)


def _bn_add_kernel(y_ref, s_ref, t_ref, r_ref, o_ref):
    o_ref[0] = y_ref[0] * s_ref[...] + t_ref[...] + r_ref[0]


def bn_act_pallas(y, scale, shift, *, alpha):
    N, C, H, W = y.shape
    HW = H * W
    out = pl.pallas_call(
        functools.partial(_bn_act_kernel, alpha=alpha),
        out_shape=jax.ShapeDtypeStruct((N, C, HW), jnp.float32),
        grid=(N,),
        in_specs=[pl.BlockSpec((1, C, HW), lambda n: (n, 0, 0)),
                  pl.BlockSpec((C, 1), lambda n: (0, 0)),
                  pl.BlockSpec((C, 1), lambda n: (0, 0))],
        out_specs=pl.BlockSpec((1, C, HW), lambda n: (n, 0, 0)),
        compiler_params=pltpu.CompilerParams(dimension_semantics=("parallel",)),
    )(y.reshape(N, C, HW), scale.reshape(C, 1), shift.reshape(C, 1))
    return out.reshape(N, C, H, W)


def bn_add_pallas(y, scale, shift, res):
    N, C, H, W = y.shape
    HW = H * W
    out = pl.pallas_call(
        _bn_add_kernel,
        out_shape=jax.ShapeDtypeStruct((N, C, HW), jnp.float32),
        grid=(N,),
        in_specs=[pl.BlockSpec((1, C, HW), lambda n: (n, 0, 0)),
                  pl.BlockSpec((C, 1), lambda n: (0, 0)),
                  pl.BlockSpec((C, 1), lambda n: (0, 0)),
                  pl.BlockSpec((1, C, HW), lambda n: (n, 0, 0))],
        out_specs=pl.BlockSpec((1, C, HW), lambda n: (n, 0, 0)),
        compiler_params=pltpu.CompilerParams(dimension_semantics=("parallel",)),
    )(y.reshape(N, C, HW), scale.reshape(C, 1), shift.reshape(C, 1),
      res.reshape(N, C, HW))
    return out.reshape(N, C, H, W)


# ---------------------------------------------------------------------------
# block_norm forward (batch_norm=True, pooling='avg'), training-mode BN stats
# ---------------------------------------------------------------------------
def _bn_fold(y, gamma, beta, eps):
    # Tiny per-channel reduction over (N, H, W) left to XLA; folded to scale/shift.
    mean = jnp.mean(y, axis=(0, 2, 3))
    var = jnp.var(y, axis=(0, 2, 3))            # biased, as BatchNorm uses in fwd
    scale = gamma * jax.lax.rsqrt(var + eps)
    shift = beta - mean * scale
    return scale, shift


def _avg_pool(x, stride):
    sh, sw = int(stride[0]), int(stride[1])
    if sh == 1 and sw == 1:
        return x                                 # AvgPool2d((1,1),(1,1)) == identity
    N, C, H, W = x.shape
    assert H % sh == 0 and W % sw == 0
    return x.reshape(N, C, H // sh, sh, W // sw, sw).mean(axis=(3, 5))


def block_norm_pallas(x, params, *, stride=(1, 1), dilation=(1, 1),
                      alpha=0.2, eps=1e-5):
    in_c = x.shape[1]
    out_c = params["w_conv"].shape[0]

    # main branch: conv -> bn0 -> leaky_relu
    y = conv2d_same_pallas(x, params["w_conv"], params["b_conv"], dilation=dilation)
    s0, t0 = _bn_fold(y, params["gamma0"], params["beta0"], eps)
    y = bn_act_pallas(y, s0, t0, alpha=alpha)

    # down_conv -> avg pool -> bn1
    y = conv2d_same_pallas(y, params["w_down"], params["b_down"])
    y = _avg_pool(y, stride)
    s1, t1 = _bn_fold(y, params["gamma1"], params["beta1"], eps)

    # skip branch
    if stride[0] > 1 or stride[1] > 1 or in_c != out_c:
        x0 = conv2d_same_pallas(x, params["w_down0"], params["b_down0"])
        x0 = _avg_pool(x0, stride)
    else:
        x0 = x

    # bn1 scale/shift fused with residual add
    return bn_add_pallas(y, s1, t1, x0)


# ---------------------------------------------------------------------------
# Pure-JAX (XLA) reference for the self-test
# ---------------------------------------------------------------------------
def _ref_conv_same(x, w, b, dilation=(1, 1)):
    kH, kW = w.shape[2], w.shape[3]
    ph = (kH - 1) * dilation[0] // 2
    pw = (kW - 1) * dilation[1] // 2
    y = jax.lax.conv_general_dilated(
        x, w, window_strides=(1, 1), padding=((ph, ph), (pw, pw)),
        rhs_dilation=dilation, dimension_numbers=("NCHW", "OIHW", "NCHW"),
        precision=jax.lax.Precision.HIGHEST)
    return y + b[None, :, None, None]


def _ref_bn(y, gamma, beta, eps):
    mean = jnp.mean(y, axis=(0, 2, 3), keepdims=True)
    var = jnp.var(y, axis=(0, 2, 3), keepdims=True)
    return ((y - mean) * jax.lax.rsqrt(var + eps)
            * gamma[None, :, None, None] + beta[None, :, None, None])


def _ref_block_norm(x, p, *, stride=(1, 1), dilation=(1, 1), alpha=0.2, eps=1e-5):
    in_c, out_c = x.shape[1], p["w_conv"].shape[0]
    y = _ref_conv_same(x, p["w_conv"], p["b_conv"], dilation)
    y = _ref_bn(y, p["gamma0"], p["beta0"], eps)
    y = jnp.where(y >= 0, y, alpha * y)
    y = _ref_conv_same(y, p["w_down"], p["b_down"])
    y = _avg_pool(y, stride)
    y = _ref_bn(y, p["gamma1"], p["beta1"], eps)
    if stride[0] > 1 or stride[1] > 1 or in_c != out_c:
        x0 = _ref_conv_same(x, p["w_down0"], p["b_down0"])
        x0 = _avg_pool(x0, stride)
    else:
        x0 = x
    return x0 + y


# ---------------------------------------------------------------------------
def _xavier_uniform(key, shape):
    fan_in = shape[1] * shape[2] * shape[3]
    fan_out = shape[0] * shape[2] * shape[3]
    a = math.sqrt(6.0 / (fan_in + fan_out))
    return jax.random.uniform(key, shape, jnp.float32, -a, a)


def _conv_bias_init(key, co, fan_in):
    bound = 1.0 / math.sqrt(fan_in)
    return jax.random.uniform(key, (co,), jnp.float32, -bound, bound)


if __name__ == "__main__":
    # block_norm(in_channels=4, out_channels=8) with module defaults:
    # kernel=(3,3), stride=(1,1), dilation=(1,1), Act=leaky_relu(0.2), pooling='avg'
    N, Cin, Cout, H, W = 2, 4, 8, 16, 16
    stride, dilation, alpha, eps = (1, 1), (1, 1), 0.2, 1e-5

    key = jax.random.PRNGKey(0)
    ks = jax.random.split(key, 7)
    x = jax.random.normal(ks[0], (N, Cin, H, W), jnp.float32)
    params = {
        "w_conv":  _xavier_uniform(ks[1], (Cout, Cin, 3, 3)),
        "b_conv":  _conv_bias_init(ks[2], Cout, Cin * 9),
        "w_down":  _xavier_uniform(ks[3], (Cout, Cout, 3, 3)),
        "b_down":  _conv_bias_init(ks[4], Cout, Cout * 9),
        "w_down0": _xavier_uniform(ks[5], (Cout, Cin, 3, 3)),
        "b_down0": _conv_bias_init(ks[6], Cout, Cin * 9),
        # BatchNorm2d affine init: weight=1, bias=0
        "gamma0": jnp.ones((Cout,), jnp.float32),
        "beta0":  jnp.zeros((Cout,), jnp.float32),
        "gamma1": jnp.ones((Cout,), jnp.float32),
        "beta1":  jnp.zeros((Cout,), jnp.float32),
    }

    out = block_norm_pallas(x, params, stride=stride, dilation=dilation,
                            alpha=alpha, eps=eps)
    out = jax.block_until_ready(out)

    ref = _ref_block_norm(x, params, stride=stride, dilation=dilation,
                          alpha=alpha, eps=eps)
    ref = jax.block_until_ready(ref)

    assert out.shape == ref.shape, (out.shape, ref.shape)
    err = float(jnp.max(jnp.abs(out - ref)))
    assert err < 2e-3, err
    print("KERNEL_OK")
</pallas_src>

<mosaic_0001>
module attributes {stable_mosaic.version = 11 : i64} {
  func.func @_conv_kernel(%arg0: i32, %arg1: memref<1x8x512xf32, #tpu.memory_space<vmem>>, %arg2: memref<8x72xf32, #tpu.memory_space<vmem>>, %arg3: memref<8x1xf32, #tpu.memory_space<vmem>>, %arg4: memref<1x8x384xf32, #tpu.memory_space<vmem>>) attributes {dimension_semantics = [#tpu.dimension_semantics<parallel>], iteration_bounds = array<i64: 2>, scalar_prefetch = 0 : i64, scratch_operands = 0 : i64, tpu.core_type = #tpu.core_type<tc>, window_params = [{transform_indices = @transform_0, window_bounds = array<i64: 1, 8, 512>}, {pipeline_mode = #tpu.pipeline_mode<synchronous>, transform_indices = @transform_1, window_bounds = array<i64: 8, 72>}, {pipeline_mode = #tpu.pipeline_mode<synchronous>, transform_indices = @transform_2, window_bounds = array<i64: 8, 1>}, {transform_indices = @transform_3, window_bounds = array<i64: 1, 8, 384>}]} {
    %c0 = arith.constant 0 : index
    %c0_0 = arith.constant 0 : index
    %c0_1 = arith.constant 0 : index
    %0 = vector.load %arg1[%c0, %c0_0, %c0_1] : memref<1x8x512xf32, #tpu.memory_space<vmem>>, vector<1x8x384xf32>
    %1 = vector.shape_cast %0 : vector<1x8x384xf32> to vector<8x384xf32>
    %c0_2 = arith.constant 0 : index
    %c0_3 = arith.constant 0 : index
    %c1 = arith.constant 1 : index
    %2 = vector.load %arg1[%c0_2, %c0_3, %c1] : memref<1x8x512xf32, #tpu.memory_space<vmem>>, vector<1x8x384xf32>
    %3 = vector.shape_cast %2 : vector<1x8x384xf32> to vector<8x384xf32>
    %c0_4 = arith.constant 0 : index
    %c0_5 = arith.constant 0 : index
    %c2 = arith.constant 2 : index
    %4 = vector.load %arg1[%c0_4, %c0_5, %c2] : memref<1x8x512xf32, #tpu.memory_space<vmem>>, vector<1x8x384xf32>
    %5 = vector.shape_cast %4 : vector<1x8x384xf32> to vector<8x384xf32>
    %c0_6 = arith.constant 0 : index
    %c0_7 = arith.constant 0 : index
    %c18 = arith.constant 18 : index
    %6 = vector.load %arg1[%c0_6, %c0_7, %c18] : memref<1x8x512xf32, #tpu.memory_space<vmem>>, vector<1x8x384xf32>
    %7 = vector.shape_cast %6 : vector<1x8x384xf32> to vector<8x384xf32>
    %c0_8 = arith.constant 0 : index
    %c0_9 = arith.constant 0 : index
    %c19 = arith.constant 19 : index
    %8 = vector.load %arg1[%c0_8, %c0_9, %c19] : memref<1x8x512xf32, #tpu.memory_space<vmem>>, vector<1x8x384xf32>
    %9 = vector.shape_cast %8 : vector<1x8x384xf32> to vector<8x384xf32>
    %c0_10 = arith.constant 0 : index
    %c0_11 = arith.constant 0 : index
    %c20 = arith.constant 20 : index
    %10 = vector.load %arg1[%c0_10, %c0_11, %c20] : memref<1x8x512xf32, #tpu.memory_space<vmem>>, vector<1x8x384xf32>
    %11 = vector.shape_cast %10 : vector<1x8x384xf32> to vector<8x384xf32>
    %c0_12 = arith.constant 0 : index
    %c0_13 = arith.constant 0 : index
    %c36 = arith.constant 36 : index
    %12 = vector.load %arg1[%c0_12, %c0_13, %c36] : memref<1x8x512xf32, #tpu.memory_space<vmem>>, vector<1x8x384xf32>
    %13 = vector.shape_cast %12 : vector<1x8x384xf32> to vector<8x384xf32>
    %c0_14 = arith.constant 0 : index
    %c0_15 = arith.constant 0 : index
    %c37 = arith.constant 37 : index
    %14 = vector.load %arg1[%c0_14, %c0_15, %c37] : memref<1x8x512xf32, #tpu.memory_space<vmem>>, vector<1x8x384xf32>
    %15 = vector.shape_cast %14 : vector<1x8x384xf32> to vector<8x384xf32>
    %c0_16 = arith.constant 0 : index
    %c0_17 = arith.constant 0 : index
    %c38 = arith.constant 38 : index
    %16 = vector.load %arg1[%c0_16, %c0_17, %c38] : memref<1x8x512xf32, #tpu.memory_space<vmem>>, vector<1x8x384xf32>
    %17 = vector.shape_cast %16 : vector<1x8x384xf32> to vector<8x384xf32>
    %18 = tpu.concatenate %1, %3, %5, %7, %9, %11, %13, %15, %17 in 0 : vector<8x384xf32>, vector<8x384xf32>, vector<8x384xf32>, vector<8x384xf32>, vector<8x384xf32>, vector<8x384xf32>, vector<8x384xf32>, vector<8x384xf32>, vector<8x384xf32> -> vector<72x384xf32>
    %c0_18 = arith.constant 0 : index
    %c0_19 = arith.constant 0 : index
    %19 = vector.load %arg2[%c0_18, %c0_19] : memref<8x72xf32, #tpu.memory_space<vmem>>, vector<8x72xf32>
    %cst = arith.constant dense<0.000000e+00> : vector<8x384xf32>
    %20 = tpu.matmul %19, %18, %cst {dimension_numbers = #tpu.dot_dimension_numbers<[1], [0], [0], [1], [0, 0, 1, 1], [], []>, precision = #tpu.contract_precision<fp32>} : vector<8x72xf32>, vector<72x384xf32>, vector<8x384xf32> -> vector<8x384xf32>
    %c0_20 = arith.constant 0 : index
    %c0_21 = arith.constant 0 : index
    %21 = vector.load %arg3[%c0_20, %c0_21] : memref<8x1xf32, #tpu.memory_space<vmem>>, vector<8x1xf32>
    %22 = vector.broadcast %21 : vector<8x1xf32> to vector<8x384xf32>
    %23 = arith.addf %20, %22 : vector<8x384xf32>
    %c0_22 = arith.constant 0 : index
    %c0_23 = arith.constant 0 : index
    %c0_24 = arith.constant 0 : index
    %24 = vector.load %arg4[%c0_22, %c0_23, %c0_24] : memref<1x8x384xf32, #tpu.memory_space<vmem>>, vector<1x8x384xf32>
    %25 = vector.shape_cast %24 : vector<1x8x384xf32> to vector<8x384xf32>
    %26 = vector.shape_cast %23 : vector<8x384xf32> to vector<1x8x384xf32>
    tpu.vector_store %arg4[%c0_22, %c0_23, %c0_24], %26 {strides = array<i32>} : memref<1x8x384xf32, #tpu.memory_space<vmem>>, vector<1x8x384xf32>,
    return
  }
  func.func @transform_0(%arg0: i32) -> (i32, i32, i32) {
    %c0_i32 = arith.constant 0 : i32
    %c0_i32_0 = arith.constant 0 : i32
    %c0_i32_1 = arith.constant 0 : i32
    return %arg0, %c0_i32, %c0_i32_0 : i32, i32, i32
  }
  func.func @transform_1(%arg0: i32) -> (i32, i32) {
    %c0_i32 = arith.constant 0 : i32
    %c0_i32_0 = arith.constant 0 : i32
    %c0_i32_1 = arith.constant 0 : i32
    return %c0_i32, %c0_i32_0 : i32, i32
  }
  func.func @transform_2(%arg0: i32) -> (i32, i32) {
    %c0_i32 = arith.constant 0 : i32
    %c0_i32_0 = arith.constant 0 : i32
    %c0_i32_1 = arith.constant 0 : i32
    return %c0_i32, %c0_i32_0 : i32, i32
  }
  func.func @transform_3(%arg0: i32) -> (i32, i32, i32) {
    %c0_i32 = arith.constant 0 : i32
    %c0_i32_0 = arith.constant 0 : i32
    %c0_i32_1 = arith.constant 0 : i32
    return %arg0, %c0_i32, %c0_i32_0 : i32, i32, i32
  }
}

</mosaic_0001>

<bundles_post_ra>
// kernel: tpu_custom_call.1
= control target key start
LH: loop header
LB: loop body
LE: loop exit
PB: predicated region body
PF: predicated region fallthrough
CT: control target
= control target key end

     0   :  { %8 = vsyncpa [#allocation3], 0  ;;  %s2988_s0 = inlined_call_operand.hbm [shape: f32[2,8,512], index: 0, kind: input, shape index: {}]   ;;  %s2989_s1 = inlined_call_operand.vmem [shape: f32[8,72], index: 1, kind: input, shape index: {}]   ;;  %s2990_s2 = inlined_call_operand.vmem [shape: f32[8,1], index: 2, kind: input, shape index: {}]   ;;  %s2991_s3 = inlined_call_operand.hbm [shape: f32[2,8,384], index: 3, kind: output, shape index: {}]  }
   0x1   :  { %10 = vsyncpa [#allocation3 + $0x1], 0 }
   0x2   :  { %11 = vsyncpa [#allocation4], 0 }
   0x3   :  { %13 = vsyncpa [#allocation4 + $0x1], 0  ;;  %s2222_s12 = smov 0   ;;  %s2224_s13 = smov 0  }
   0x4   :  { %s2226_s14 = smov 0   ;;  %s2228_s15 = smov 0  }
   0x5 LB: > { %s2243_s16 = sadd.s32 4294967295, %s2186_s15   ;;  %s1640_s17 = sadd.s32 4294967294, %s2186_s15   ;;  %s2186_s15 = sphi %s2228_s15, %s3104_s15   ;;  %s2182_s14 = sphi %s2226_s14, %s3103_s14   ;;  %s2178_s13 = sphi %s2224_s13, %s3102_s13   ;;  %s2174_s12 = sphi %s2222_s12, %s3101_s12  }
   0x6   : > { %s2247_s18 = sadd.s32 1, %s2186_s15   ;;  %s26_s19 = sadd.s32 1, %s2182_s14 }
   0x7   : > { %s23_s20 = ssub.s32 %s2186_s15, %s2247_s18  ;;  %p33_p0 = scmp.ne.s32.totalorder %s2182_s14, %s2178_s13 }
   0x8   : > { %p24_p1 = scmp.eq.s32.totalorder %s23_s20, 0  ;;  %p34_p2 = scmp.eq.s32.totalorder %s2186_s15, 0 }
   0x9   : > { %p39_p3 = scmp.ne.s32.totalorder %s2178_s13, %s2174_s12  ;;  %p40_p4 = scmp.eq.s32.totalorder %s2243_s16, 0 }
   0xa   : > { %s2259_s21 = scalar_select %p24_p1, %s2182_s14, %s26_s19  }
   0xb   : > { %p2261_p5 = por %p34_p2, %p33_p0  ;;  %p2265_p6 = por %p40_p4, %p39_p3 }
   0xc   : > { %p105_p7 = scmp.eq.s32.totalorder %s2243_s16, 1  ;;  %p111_p8 = scmp.eq.s32.totalorder %s1640_s17, 1 }
   0xd   : > { %p2043_p10 = scmp.lt.s32.totalorder %s2186_s15, 2  ;;  %s137_s26 = sand.u32 1, %s2182_s14  }
   0xe   : > { %p2272_p11 = por %p105_p7, %p33_p0  ;;  %p2276_p12 = por %p111_p8, %p39_p3 }
   0xf   : > { %s1651_s27 = sshll.u32 %s2186_s15, 9  ;;  %s1643_s28 = sshll.u32 %s137_s26, 5 }
  0x10   : > { %s3034_s24 = scalar_select %p2272_p11, 1, 0 }
  0x11   : > { %s3035_s25 = scalar_select %p2276_p12, 1, 0 }
  0x12   : > { %s2285_s4 = scalar_lea.hbm %s2988_s0, %s1651_s27  ;;  %s141_s5 = scalar_lea.vmem [#allocation2], %s1643_s28 }
  0x13   : > { %s149_s6 = sshll.u32 %s141_s5, 4  ;;  %p2289_p13 = pnand %p2043_p10, %p2261_p5  ;;  %s2293_s6 = int_to_ptr.vmem [resolvable:$true] %s149_s6 }
  0x14   : > { %s138_s8 = scalar_lea.sflag [#allocation3], %s137_s26  ;;  %s2090_s9 = scalar_lea.hbm %s2285_s4, 512 }
  0x15   : > { %p2091_p2 = scmp.ne.s32.totalorder %s2285_s4, %s2090_s9  ;;  %p2092_p3 = pneg %p2289_p13 }
  0x16   : > { %s2095_s17 = scalar_lea.hbm %s2988_s0, 1024  ;;  %p2096_p5 = scmp.lt.u32.totalorder %s2285_s4, %s2988_s0 }
  0x17   : > { %p2093_p4 = pnand %p2092_p3, %p2091_p2  ;;  %p2097_p8 = scmp.lt.u32.totalorder %s2095_s17, %s2090_s9 }
  0x18   : > { %p2099_p9 = scmp.lt.u32.totalorder %s2090_s9, %s2285_s4 }
  0x19   : > { %p2094_p7 = pneg %p2093_p4  ;;  %p2098_p10 = por %p2097_p8, %p2096_p5 }
  0x1b   : > { %p2100_p0 = por %p2099_p9, %p2098_p10 }
  0x1d   : > { %p2101_p1 = pnand %p2100_p0, %p2094_p7 }
  0x1f   : > { %2104 = shalt.err (!%p2101_p1)
}
  0x20   : > { %s2105_s22 = scalar_lea.vmem %s2293_s6, 512  ;;  %s2188_s26 = smov [#allocation2]  }
  0x21   : > { %p2106_p2 = scmp.ne.s32.totalorder %s2293_s6, %s2105_s22  ;;  %s2110_s27 = sshll.u32 %s2188_s26, 4  ;;  %s2111_s27 = int_to_ptr.vmem [resolvable:$false] %s2110_s27 }
  0x22   : > { %s2112_s28 = scalar_lea.vmem %s2111_s27, 1024  ;;  %p2113_p11 = scmp.lt.s32.totalorder %s2293_s6, %s2111_s27 }
  0x23   : > { %p2108_p4 = pnand %p2106_p2, %p2092_p3  ;;  %p2114_p5 = scmp.lt.s32.totalorder %s2112_s28, %s2105_s22 }
  0x25   : > { %p2109_p12 = pneg %p2108_p4  ;;  %p2115_p8 = por %p2114_p5, %p2113_p11 }
  0x27   : > { %p2116_p9 = pnand %p2115_p8, %p2109_p12 }
  0x29   : > { %2119 = shalt.err (!%p2116_p9)
}
  0x2a   : > { %2038 = dma.hbm_to_vmem [thread:$0]  (!%p2289_p13), %s2285_s4, 512, %s2293_s6, %s138_s8  }
  0x2b   : > { %p3037_p0 = scmp.lt.s32.totalorder %s2186_s15, 3  ;;  %p3038_p1 = scmp.ge.s32.totalorder %s2186_s15, 1 }
  0x2d   : > { %p155_p3 = pnand %p3038_p1, %p3037_p0 }
  0x2f   : > { %158 = sbr.rel (%p155_p3) target bundleno = 562 (0x232), region = 32 }
  0x36   : > { %s2327_s29 = sand.u32 1, %s2178_s13  }
  0x37   : > { %s1647_s30 = sshll.u32 %s2327_s29, 5  ;;  %s161_s5 = scalar_lea.sflag [#allocation3], %s2327_s29 }
  0x38   : > { %s164_s9 = scalar_lea.vmem [#allocation2], %s1647_s30 }
  0x39   : > { %2165 = dma.done.wait (%p2265_p6), %s161_s5, 512  }
  0x3a   : > { %2167 = vsyncadd (%p2265_p6), %s161_s5, 4294966784  ;;  %v2999_v0 = vmov 0.0|0.0   ;;  %v2336_v1 = vld [vmem:[%s164_s9 + $0x8] sm:$0xff]  ;;  %v2338_v2 = vld [vmem:[%s164_s9] sm:$0xff]  ;;  %s2190_s4 = smov 127   ;;  %s2191_s23 = smov 126  }
  0x3b   : > { %1934 = vmatprep.subr.bf16.mxu1 %v2999_v0  ;;  %200 = vrot.lane.b32.xlu0 %v2336_v1, %s2190_s4  ;;  %v2342_v3 = vld [vmem:[%s164_s9 + $0x10] sm:$0xff]  ;;  %v193_v4 = vld [vmem:[%s164_s9 + $0x18] sm:$0xff]  ;;  %s2192_s6 = smov 110   ;;  %s2193_s7 = smov 109   ;;  %v3001_v5 = vmov 0.0   ;;  %vm2198_vm0 = vmmov 0  }
  0x3c   : > { %198 = vrot.lane.b32.xlu1 %v2338_v2, %s2190_s4  ;;  %s2194_s8 = smov 108   ;;  %s2195_s10 = smov 92   ;;  %411 = vmatprep.mubr.f32.mxu0 %v3001_v5  ;;  %vm206_vm1 = vcmask 1039360   ;;  %v329_v11 = vand.u32 4294901760, %v2336_v1  ;;  %v1003_v12 = vand.u32 4294901760, %v2342_v3  ;;  %v331_v16 = vand.u32 4294901760, %v2338_v2 }
  0x3d   : > { %s2196_s11 = smov 91   ;;  %1730 = vmatprep.mubr.msk.f32.mxu1 %vm2198_vm0, %v3001_v5  ;;  %s2199_s17 = smov 90   ;;  %vm221_vm2 = vcmask 1031168   ;;  %vm236_vm3 = vcmask 900096   ;;  %vm251_vm4 = vcmask 891904   ;;  %vm266_vm5 = vcmask 883712  }
  0x3e   : > { %v318_v50 = vld [vmem:[%s2989_s1] sm:$0xff]  ;;  %vm325_vm6 = vcmask 588800   ;;  %v2455_v55 = vsub.f32 %v2336_v1, %v329_v11  ;;  %v2467_v60 = vsub.f32 %v2342_v3, %v1003_v12  ;;  %v2470_v61 = vsub.f32 %v2338_v2, %v331_v16  ;;  %s2029_s27 = smul.u32 24, %s2327_s29  ;;  %p3098_p11 = scmp.ne.s32.totalorder %s3034_s24, 0 }
  0x3f   : > { %202 = vrot.lane.b32.xlu0 %v2342_v3, %s2190_s4  ;;  %v327_v54 = vsel %vm325_vm6, %v318_v50, 0  ;;  %v319_v59 = vld [vmem:[%s2990_s2] sm:$0xff]  ;;  %vm281_vm7 = vcmask 752640   ;;  %vm296_vm8 = vcmask 744448   ;;  %vm311_vm9 = vcmask 736256   ;;  %s2030_s28 = smul.u32 384, %s2243_s16 }
  0x40   : > { %204 = vrot.lane.b32.xlu1 %v193_v4, %s2190_s4  ;;  %s186_s30 = scalar_lea.vmem [#allocation5], %s2029_s27  ;;  %s1556_s16 = scalar_lea.sflag [#allocation4], %s2327_s29 }
  0x41   : > { %s1570_s5 = sshll.u32 %s186_s30, 4  ;;  %s2946_s5 = int_to_ptr.vmem [resolvable:$true] %s1570_s5 }
  0x43   : > { %215 = vrot.lane.b32.xlu0 %v2336_v1, %s2191_s23 }
  0x44   : > { %217 = vrot.lane.b32.xlu1 %v2342_v3, %s2191_s23 }
  0x47   : > { %230 = vrot.lane.b32.xlu0 %v2336_v1, %s2192_s6 }
  0x48   : > { %232 = vrot.lane.b32.xlu1 %v2342_v3, %s2192_s6 }
  0x4b   : > { %213 = vrot.lane.b32.xlu0 %v2338_v2, %s2191_s23 }
  0x4c   : > { %228 = vrot.lane.b32.xlu1 %v2338_v2, %s2192_s6 }
  0x4f   : > { %219 = vrot.lane.b32.xlu0 %v193_v4, %s2191_s23  ;;  %s2944_s23 = scalar_lea.hbm %s2991_s3, %s2030_s28 }
  0x50   : > { %234 = vrot.lane.b32.xlu1 %v193_v4, %s2192_s6  ;;  %s2120_s6 = scalar_lea.vmem %s2946_s5, 384 }
  0x51   : > { %p2121_p6 = scmp.ne.s32.totalorder %s2946_s5, %s2120_s6 }
  0x53   : > { %245 = vrot.lane.b32.xlu0 %v2336_v1, %s2193_s7  ;;  %p2122_p12 = pnand %p2121_p6, %p3098_p11 }
  0x54   : > { %247 = vrot.lane.b32.xlu1 %v2342_v3, %s2193_s7 }
  0x55   : > { %p2123_p13 = pneg %p2122_p12 }
  0x57   : > { %260 = vrot.lane.b32.xlu0 %v2336_v1, %s2194_s8 }
  0x58   : > { %262 = vrot.lane.b32.xlu1 %v2342_v3, %s2194_s8 }
  0x5b   : > { %243 = vrot.lane.b32.xlu0 %v2338_v2, %s2193_s7 }
  0x5c   : > { %258 = vrot.lane.b32.xlu1 %v2338_v2, %s2194_s8 }
  0x5f   : > { %249 = vrot.lane.b32.xlu0 %v193_v4, %s2193_s7  ;;  %s2201_s7 = smov [#allocation5]  }
  0x60   : > { %264 = vrot.lane.b32.xlu1 %v193_v4, %s2194_s8  ;;  %s2124_s8 = sshll.u32 %s2201_s7, 4  ;;  %s2125_s8 = int_to_ptr.vmem [resolvable:$false] %s2124_s8 }
  0x61   : > { %p2127_p7 = scmp.lt.s32.totalorder %s2946_s5, %s2125_s8 }
  0x63   : > { %275 = vrot.lane.b32.xlu0 %v2336_v1, %s2195_s10 }
  0x64   : > { %277 = vrot.lane.b32.xlu1 %v2342_v3, %s2195_s10 }
  0x67   : > { %290 = vrot.lane.b32.xlu0 %v2336_v1, %s2196_s11 }
  0x68   : > { %292 = vrot.lane.b32.xlu1 %v2342_v3, %s2196_s11 }
  0x6b   : > { %273 = vrot.lane.b32.xlu0 %v2338_v2, %s2195_s10 }
  0x6c   : > { %288 = vrot.lane.b32.xlu1 %v2338_v2, %s2196_s11 }
  0x6f   : > { %279 = vrot.lane.b32.xlu0 %v193_v4, %s2195_s10  ;;  %s2126_s10 = scalar_lea.vmem %s2125_s8, 768 }
  0x70   : > { %294 = vrot.lane.b32.xlu1 %v193_v4, %s2196_s11  ;;  %p2128_p10 = scmp.lt.s32.totalorder %s2126_s10, %s2120_s6 }
  0x72   : > { %p2129_p2 = por %p2128_p10, %p2127_p7 }
  0x73   : > { %305 = vrot.lane.b32.xlu0 %v2336_v1, %s2199_s17  ;;  %v2200_v1 = vmov 0  }
  0x74   : > { %307 = vrot.lane.b32.xlu1 %v2342_v3, %s2199_s17  ;;  %2089 = vset.pattern.permute.xlu0 %v2200_v1  ;;  %p2130_p4 = pnand %p2129_p2, %p2123_p13 }
  0x77   : > { %303 = vrot.lane.b32.xlu0 %v2338_v2, %s2199_s17 }
  0x78   : > { %309 = vrot.lane.b32.xlu1 %v193_v4, %s2199_s17 }
  0x7b   : > { %322 = vperm.xlu0 %2089, %v319_v59  }
  0xad   : > { %v201_v6 = vpop.permute.xlu0 %200 }
  0xae   : > { %v199_v7 = vpop.permute.xlu1 %198 }
  0xaf   : > { %v2369_v8 = vsel %vm206_vm1, %v199_v7, %v201_v6  ;;  %v2481_v7 = vand.u32 4294901760, %v327_v54 }
  0xb0   : > { %v335_v13 = vand.u32 4294901760, %v2369_v8 }
  0xb1   : > { %v203_v9 = vpop.permute.xlu0 %202 }
  0xb2   : > { %v205_v10 = vpop.permute.xlu1 %204  ;;  %v2374_v14 = vsel %vm206_vm1, %v201_v6, %v203_v9  ;;  %v2391_v23 = vpack.c.bf16 %v335_v13, %v331_v16  ;;  %v2486_v2 = vsub.f32 %v2369_v8, %v335_v13  ;;  %v2998_v8 = vand.u32 4294901760, %v2455_v55 }
  0xb3   : > { %v2376_v15 = vsel %vm206_vm1, %v203_v9, %v205_v10  ;;  %v333_v17 = vand.u32 4294901760, %v2374_v14  ;;  %v2996_v16 = vand.u32 4294901760, %v2470_v61 }
  0xb4   : > { %v1006_v18 = vand.u32 4294901760, %v2376_v15 }
  0xb5   : > { %v216_v19 = vpop.permute.xlu0 %215  ;;  %v2383_v21 = vpack.c.bf16 %v333_v17, %v329_v11  ;;  %v2491_v3 = vsub.f32 %v2374_v14, %v333_v17 }
  0xb6   : > { %v218_v20 = vpop.permute.xlu1 %217  ;;  %v2387_v22 = vpack.c.bf16 %v1006_v18, %v1003_v12  ;;  %v2496_v9 = vsub.f32 %v2376_v15, %v1006_v18  ;;  %v2994_v15 = vand.u32 4294901760, %v2467_v60  ;;  %v2516_v18 = vsub.f32 %v327_v54, %v2481_v7 }
  0xb7   : > { %1839 = vmatprep.subr.bf16.mxu0 %v2383_v21  ;;  %v2395_v24 = vsel %vm221_vm2, %v216_v19, %v218_v20 }
  0xb8   : > { %1936 = vmatpush3.bf16.msra.mxu1 %v2387_v22  ;;  %1841 = vmatpush1.bf16.msra.mxu0 %v2391_v23  ;;  %v337_v28 = vand.u32 4294901760, %v2395_v24 }
  0xb9   : > { %v231_v25 = vpop.permute.xlu0 %230  ;;  %1937 = vmatprep.subr.bf16.mxu1 %v2999_v0 }
  0xba   : > { %v233_v26 = vpop.permute.xlu1 %232 }
  0xbb   : > { %v2401_v27 = vsel %vm236_vm3, %v231_v25, %v233_v26 }
  0xbc   : > { %v341_v29 = vand.u32 4294901760, %v2401_v27 }
  0xbd   : > { %v214_v30 = vpop.permute.xlu0 %213 }
  0xbe   : > { %v229_v31 = vpop.permute.xlu1 %228  ;;  %v2409_v32 = vpack.c.bf16 %v341_v29, %v337_v28  ;;  %v2412_v33 = vsel %vm221_vm2, %v214_v30, %v216_v19  ;;  %v2995_v19 = vand.u32 4294901760, %v2486_v2 }
  0xbf   : > { %v2415_v34 = vsel %vm236_vm3, %v229_v31, %v231_v25  ;;  %v339_v35 = vand.u32 4294901760, %v2412_v33  ;;  %v2993_v25 = vand.u32 4294901760, %v2496_v9 }
  0xc0   : > { %v343_v36 = vand.u32 4294901760, %v2415_v34  ;;  %1843 = vmatprep.subr.bf16.mxu0 %v2409_v32  ;;  %v444_v50 = vsub.f32 %v2486_v2, %v2995_v19 }
  0xc1   : > { %v220_v37 = vpop.permute.xlu0 %219  ;;  %v1097_v54 = vsub.f32 %v2496_v9, %v2993_v25 }
  0xc2   : > { %v235_v38 = vpop.permute.xlu1 %234  ;;  %v2424_v39 = vpack.c.bf16 %v343_v36, %v339_v35  ;;  %v2427_v40 = vsel %vm221_vm2, %v218_v20, %v220_v37  ;;  %v2997_v20 = vand.u32 4294901760, %v2491_v3  ;;  %v426_v37 = vsub.f32 %v2455_v55, %v2998_v8 }
  0xc3   : > { %v2430_v41 = vsel %vm236_vm3, %v233_v26, %v235_v38  ;;  %v1009_v42 = vand.u32 4294901760, %v2427_v40  ;;  %v2571_v59 = vsub.f32 %v2415_v34, %v343_v36  ;;  %v1098_v19 = vand.u32 4294901760, %v1097_v54 }
  0xc4   : > { %3039 = vst [vmem:[#allocation8_spill] sm:$0xff] %v2424_v39  ;;  %1845 = vmatpush1.bf16.msra.mxu0 %v2424_v39  ;;  %v1012_v43 = vand.u32 4294901760, %v2430_v41 }
  0xc5   : > { %v246_v44 = vpop.permute.xlu0 %245 }
  0xc6   : > { %v248_v45 = vpop.permute.xlu1 %247  ;;  %v2439_v46 = vpack.c.bf16 %v1012_v43, %v1009_v42  ;;  %v2584_v34 = vsub.f32 %v2430_v41, %v1012_v43 }
  0xc7   : > { %v2442_v47 = vsel %vm251_vm4, %v246_v44, %v248_v45 }
  0xc8   : > { %3040 = vst [vmem:[#allocation9_spill] sm:$0xff] %v2439_v46  ;;  %1939 = vmatpush3.bf16.msra.mxu1 %v2439_v46  ;;  %v345_v52 = vand.u32 4294901760, %v2442_v47  ;;  %v3011_v54 = vand.u32 4294901760, %v2584_v34 }
  0xc9   : > { %v261_v48 = vpop.permute.xlu0 %260  ;;  %1940 = vmatprep.subr.bf16.mxu1 %v2999_v0 }
  0xca   : > { %v263_v49 = vpop.permute.xlu1 %262 }
  0xcb   : > { %v2450_v51 = vsel %vm266_vm5, %v261_v48, %v263_v49 }
  0xcc   : > { %v349_v53 = vand.u32 4294901760, %v2450_v51 }
  0xcd   : > { %v244_v56 = vpop.permute.xlu0 %243 }
  0xce   : > { %v259_v57 = vpop.permute.xlu1 %258  ;;  %v2461_v58 = vpack.c.bf16 %v349_v53, %v345_v52  ;;  %v2473_v62 = vsel %vm251_vm4, %v244_v56, %v246_v44  ;;  %v432_v44 = vsub.f32 %v2470_v61, %v2996_v16 }
  0xcf   : > { %v2476_v63 = vsel %vm266_vm5, %v259_v57, %v261_v48  ;;  %v3006_v4 = vand.u32 4294901760, %v2473_v62  ;;  %v2540_v48 = vsub.f32 %v2395_v24, %v337_v28  ;;  %v438_v24 = vsub.f32 %v2491_v3, %v2997_v20 }
  0xd0   : > { %3041 = vst [vmem:[#allocation10_spill] sm:$0xff] %v2461_v58  ;;  %v3005_v6 = vand.u32 4294901760, %v2476_v63  ;;  %1847 = vmatprep.subr.bf16.mxu0 %v2461_v58  ;;  %v2561_v28 = vsub.f32 %v2401_v27, %v341_v29  ;;  %v2566_v57 = vsub.f32 %v2412_v33, %v339_v35  ;;  %v2577_v27 = vsub.f32 %v2427_v40, %v1009_v42 }
  0xd1   : > { %v250_v10 = vpop.permute.xlu0 %249  ;;  %v433_v25 = vand.u32 4294901760, %v432_v44  ;;  %v3007_v35 = vand.u32 4294901760, %v2540_v48  ;;  %v439_v16 = vand.u32 4294901760, %v438_v24 }
  0xd2   : > { %v265_v11 = vpop.permute.xlu1 %264  ;;  %v2502_v12 = vpack.c.bf16 %v3005_v6, %v3006_v4  ;;  %v2506_v13 = vsel %vm251_vm4, %v248_v45, %v250_v10  ;;  %v1090_v45 = vsub.f32 %v2467_v60, %v2994_v15  ;;  %v3012_v42 = vand.u32 4294901760, %v2561_v28 }
  0xd3   : > { %v2509_v14 = vsel %vm266_vm5, %v263_v49, %v265_v11  ;;  %v3004_v17 = vand.u32 4294901760, %v2506_v13  ;;  %v2543_v49 = vand.u32 4294901760, %v2516_v18  ;;  %v427_v11 = vand.u32 4294901760, %v426_v37 }
  0xd4   : > { %3042 = vst [vmem:[#allocation11_spill] sm:$0xff] %v2502_v12  ;;  %1849 = vmatpush1.bf16.msra.mxu0 %v2502_v12  ;;  %v3003_v26 = vand.u32 4294901760, %v2509_v14  ;;  %v1091_v33 = vand.u32 4294901760, %v1090_v45  ;;  %v445_v37 = vand.u32 4294901760, %v444_v50  ;;  %v3010_v44 = vand.u32 4294901760, %v2566_v57 }
  0xd5   : > { %v276_v30 = vpop.permute.xlu0 %275  ;;  %3044 = vst [vmem:[#allocation13_spill] sm:$0xff] %v2543_v49  ;;  %v415_v40 = vsub.f32 %v2516_v18, %v2543_v49  ;;  %v3008_v45 = vand.u32 4294901760, %v2571_v59  ;;  %v3009_v41 = vand.u32 4294901760, %v2577_v27 }
  0xd6   : > { %v278_v31 = vpop.permute.xlu1 %277  ;;  %v2529_v38 = vpack.c.bf16 %v3003_v26, %v3004_v17  ;;  %v2602_v26 = vsub.f32 %v2540_v48, %v3007_v35  ;;  %v2604_v17 = vpack.c.bf16 %v439_v16, %v427_v11  ;;  %v2608_v4 = vpack.c.bf16 %v445_v37, %v433_v25 }
  0xd7   : > { %v2552_v56 = vsel %vm281_vm7, %v276_v30, %v278_v31  ;;  %v2606_v6 = vand.u32 4294901760, %v415_v40  ;;  %v2627_v25 = vsub.f32 %v2561_v28, %v3012_v42  ;;  %v2637_v11 = vsub.f32 %v2442_v47, %v345_v52 }
  0xd8   : > { %3043 = vst [vmem:[#allocation12_spill] sm:$0xff] %v2529_v38  ;;  %1942 = vmatpush3.bf16.msra.mxu1 %v2529_v38  ;;  %v353_v36 = vand.u32 4294901760, %v2552_v56  ;;  %v1111_v40 = vsub.f32 %v2584_v34, %v3011_v54  ;;  %v3047_v47 = vand.u32 4294901760, %v2473_v62  ;;  %v3050_v54 = vand.u32 4294901760, %v2509_v14 }
  0xd9   : > { %v291_v1 = vpop.permute.xlu0 %290  ;;  %1943 = vmatprep.subr.bf16.mxu1 %v2999_v0  ;;  %v3053_v49 = vand.u32 4294901760, %v2637_v11 }
  0xda   : > { %v293_v10 = vpop.permute.xlu1 %292  ;;  %v2654_v52 = vsub.f32 %v2473_v62, %v3047_v47  ;;  %v2671_v62 = vsub.f32 %v2509_v14, %v3050_v54  ;;  %v3052_v54 = vmov 0.0  }
  0xdb   : > { %v298_v29 = vsel %vm296_vm8, %v291_v1, %v293_v10 }
  0xdc   : > { %v357_v15 = vand.u32 4294901760, %v298_v29  ;;  %v3023_v14 = vand.u32 4294901760, %v2654_v52 }
  0xdd   : > { %v274_v20 = vpop.permute.xlu0 %273 }
  0xde   : > { %v289_v8 = vpop.permute.xlu1 %288  ;;  %v2592_v0 = vpack.c.bf16 %v357_v15, %v353_v36  ;;  %v282_v43 = vsel %vm281_vm7, %v274_v20, %v276_v30  ;;  %v2610_v20 = vpack.c.bf16 %v1098_v19, %v1091_v33  ;;  %v2620_v30 = vsub.f32 %v2571_v59, %v3008_v45 }
  0xdf   : > { %v297_v50 = vsel %vm296_vm8, %v289_v8, %v291_v1  ;;  %v355_v24 = vand.u32 4294901760, %v282_v43  ;;  %v2615_v8 = vsub.f32 %v2566_v57, %v3010_v44  ;;  %v2632_v19 = vsub.f32 %v2577_v27, %v3009_v41 }
  0xe0   : > { %3045 = vst [vmem:[#allocation14_spill] sm:$0xff] %v2592_v0  ;;  %v359_v5 = vand.u32 4294901760, %v297_v50  ;;  %1851 = vmatprep.subr.bf16.mxu0 %v2592_v0  ;;  %v2647_v45 = vsub.f32 %v2450_v51, %v349_v53  ;;  %v451_v44 = vand.u32 4294901760, %v2602_v26  ;;  %v469_v26 = vand.u32 4294901760, %v2620_v30 }
  0xe1   : > { %v280_v1 = vpop.permute.xlu0 %279 }
  0xe2   : > { %v295_v35 = vpop.permute.xlu1 %294  ;;  %v2622_v16 = vpack.c.bf16 %v359_v5, %v355_v24  ;;  %v284_v33 = vsel %vm281_vm7, %v278_v31, %v280_v1  ;;  %v3048_v31 = vand.u32 4294901760, %v2476_v63  ;;  %v457_v1 = vand.u32 4294901760, %v2615_v8 }
  0xe3   : > { %v299_v37 = vsel %vm296_vm8, %v293_v10, %v295_v35  ;;  %v1021_v41 = vand.u32 4294901760, %v284_v33  ;;  %v3049_v35 = vand.u32 4294901760, %v2506_v13  ;;  %v1112_v8 = vand.u32 4294901760, %v1111_v40 }
  0xe4   : > { %3046 = vst [vmem:[#allocation15_spill] sm:$0xff] %v2622_v16  ;;  %1853 = vmatpush1.bf16.msra.mxu0 %v2622_v16  ;;  %v2659_v10 = vsub.f32 %v2476_v63, %v3048_v31  ;;  %v1024_v53 = vand.u32 4294901760, %v299_v37  ;;  %v463_v63 = vand.u32 4294901760, %v2627_v25  ;;  %v1105_v31 = vand.u32 4294901760, %v2632_v19 }
  0xe5   : > { %v2664_v51 = vsub.f32 %v2506_v13, %v3049_v35  ;;  %v306_v47 = vpop.permute.xlu0 %305  ;;  %v2680_v16 = vsub.f32 %v298_v29, %v357_v15  ;;  %v2688_v19 = vsub.f32 %v2552_v56, %v353_v36  ;;  %v2692_v40 = vsub.f32 %v282_v43, %v355_v24 }
  0xe6   : > { %v308_v42 = vpop.permute.xlu1 %307  ;;  %v2677_v35 = vpack.c.bf16 %v1024_v53, %v1021_v41  ;;  %v2694_v30 = vsub.f32 %v297_v50, %v359_v5  ;;  %v2696_v15 = vsub.f32 %v284_v33, %v1021_v41  ;;  %v2700_v25 = vsub.f32 %v299_v37, %v1024_v53 }
  0xe7   : > { %v313_v13 = vsel %vm311_vm9, %v306_v47, %v308_v42  ;;  %v474_v43 = vsub.f32 %v2637_v11, %v3053_v49  ;;  %v3054_v24 = vand.u32 4294901760, %v2647_v45  ;;  %v480_v37 = vsub.f32 %v2654_v52, %v3023_v14 }
  0xe8   : > { %3051 = vst [vmem:[#allocation16_spill] sm:$0xff] %v2677_v35  ;;  %v2682_v0 = vand.u32 4294901760, %v313_v13  ;;  %1945 = vmatpush3.bf16.msra.mxu1 %v2677_v35  ;;  %v3056_v49 = vand.u32 4294901760, %v2664_v51  ;;  %v1860_v12 = vpack.c.bf16 %v469_v26, %v457_v1  ;;  %v1950_v58 = vpack.c.bf16 %v1112_v8, %v1105_v31 }
  0xe9   : > { %v304_v29 = vpop.permute.xlu0 %303  ;;  %1728 = vmatprep.subr.mxu1 %v3052_v54  ;;  %v486_v33 = vsub.f32 %v2647_v45, %v3054_v24  ;;  %v475_v14 = vand.u32 4294901760, %v474_v43  ;;  %v3059_v24 = vand.u32 4294901760, %v2680_v16  ;;  %v481_v46 = vand.u32 4294901760, %v480_v37 }
  0xea   : > { %v310_v38 = vpop.permute.xlu1 %309  ;;  %362 = vmatprep.subr.mxu0 %v2682_v0  ;;  %v312_v56 = vsel %vm311_vm9, %v304_v29, %v306_v47  ;;  %v1118_v53 = vsub.f32 %v2664_v51, %v3056_v49  ;;  %v3057_v29 = vand.u32 4294901760, %v2671_v62  ;;  %v3058_v49 = vmov 0.0|0.0  }
  0xeb   : > { %v314_v36 = vsel %vm311_vm9, %v308_v42, %v310_v38  ;;  %v2708_v41 = vand.u32 4294901760, %v312_v56  ;;  %v3055_v38 = vand.u32 4294901760, %v2659_v10  ;;  %v1858_v47 = vpack.c.bf16 %v463_v63, %v451_v44 }
  0xec   : > { %v2710_v50 = vand.u32 4294901760, %v314_v36  ;;  %v1125_v5 = vsub.f32 %v2671_v62, %v3057_v29  ;;  %v2737_v29 = vsub.f32 %v313_v13, %v2682_v0  ;;  %v487_v35 = vand.u32 4294901760, %v486_v33 }
  0xed   : > { %v492_v42 = vsub.f32 %v2659_v10, %v3055_v38  ;;  %364 = vmatpush1.msra.mxu0 %v2708_v41  ;;  %v510_v38 = vsub.f32 %v2680_v16, %v3059_v24  ;;  %v1119_v39 = vand.u32 4294901760, %v1118_v53  ;;  %v3060_v44 = vand.u32 4294901760, %v2688_v19 }
  0xee   : > { %1729 = vmatpush3.msra.mxu1 %v2710_v50  ;;  %1855 = vmatprep.subr.bf16.mxu0 %v2604_v17  ;;  %v1126_v26 = vand.u32 4294901760, %v1125_v5  ;;  %v3062_v31 = vand.u32 4294901760, %v2694_v30  ;;  %v3063_v8 = vand.u32 4294901760, %v2696_v15  ;;  %v2763_v5 = vsub.f32 %v312_v56, %v2708_v41 }
  0xef   : > { %1946 = vmatprep.subr.bf16.mxu1 %v3058_v49  ;;  %417 = vmatmul.mubr.f32.vlgmr.msra.gmra.mrb[0].mxu0 %v2606_v6  ;;  %v493_v17 = vand.u32 4294901760, %v492_v42  ;;  %v498_v1 = vsub.f32 %v2688_v19, %v3060_v44  ;;  %v2766_v33 = vsub.f32 %v314_v36, %v2710_v50  ;;  %v1862_v37 = vpack.c.bf16 %v487_v35, %v475_v14 }
  0xf0   : > { %1731 = vmatmul.mubr.f32.vlgmr.msra.gmra.mrb[0].mxu1 %v2606_v6  ;;  %1857 = vmatpush1.bf16.msra.mxu0 %v2608_v4  ;;  %v3061_v6 = vand.u32 4294901760, %v2692_v40  ;;  %v516_v13 = vsub.f32 %v2694_v30, %v3062_v31  ;;  %v1132_v43 = vsub.f32 %v2696_v15, %v3063_v8  ;;  %v3064_v4 = vand.u32 4294901760, %v2700_v25 }
  0xf1   : > { %1948 = vmatpush3.bf16.msra.mxu1 %v2610_v20  ;;  %1859 = vmatprep.subr.bf16.mxu0 %v1858_v47  ;;  %v511_v42 = vand.u32 4294901760, %v510_v38  ;;  %v521_v53 = vand.u32 4294901760, %v2737_v29  ;;  %v1864_v47 = vpack.c.bf16 %v493_v17, %v481_v46  ;;  %v1953_v56 = vpack.c.bf16 %v1126_v26, %v1119_v39 }
  0xf2   : > { %v504_v63 = vsub.f32 %v2692_v40, %v3061_v6  ;;  %1949 = vmatprep.subr.bf16.mxu1 %v3058_v49  ;;  %v1139_v20 = vsub.f32 %v2700_v25, %v3064_v4  ;;  %577 = vmatprep.mubr.f32.mxu0 %v3052_v54  ;;  %v517_v44 = vand.u32 4294901760, %v516_v13  ;;  %v499_v36 = vand.u32 4294901760, %v498_v1 }
  0xf3   : > { %1751 = vmatprep.mubr.msk.f32.mxu1 %vm2198_vm0, %v3052_v54  ;;  %v1133_v6 = vand.u32 4294901760, %v1132_v43  ;;  %v527_v8 = vand.u32 4294901760, %v2763_v5  ;;  %v1145_v4 = vand.u32 4294901760, %v2766_v33  ;;  %v1870_v26 = vpack.c.bf16 %v2491_v3, %v2455_v55 }
  0xf4   : > { %1861 = vmatpush1.bf16.msra.mxu0 %v1860_v12  ;;  %v505_v24 = vand.u32 4294901760, %v504_v63  ;;  %v1140_v31 = vand.u32 4294901760, %v1139_v20  ;;  %v1866_v35 = vpack.c.bf16 %v511_v42, %v499_v36  ;;  %v522_v12 = vsub.f32 %v2737_v29, %v521_v53 }
  0xf5   : > { %1951 = vmatpush3.bf16.msra.mxu1 %v1950_v58  ;;  %1863 = vmatprep.subr.bf16.mxu0 %v1862_v37  ;;  %v528_v39 = vsub.f32 %v2763_v5, %v527_v8  ;;  %v1146_v46 = vsub.f32 %v2766_v33, %v1145_v4  ;;  %v1872_v63 = vpack.c.bf16 %v2486_v2, %v2470_v61 }
  0xf6   : > { %1952 = vmatprep.subr.bf16.mxu1 %v3058_v49  ;;  %v1868_v58 = vpack.c.bf16 %v517_v44, %v505_v24  ;;  %v1956_v14 = vpack.c.bf16 %v1140_v31, %v1133_v6  ;;  %v523_v38 = vand.u32 4294901760, %v522_v12  ;;  %v1959_v13 = vpack.c.bf16 %v2496_v9, %v2467_v60  ;;  %v3065_v6 = vld [vmem:[#allocation8_spill] sm:$0xff]  ;;  %v3066_v31 = vld [vmem:[#allocation9_spill] sm:$0xff] }
  0xf7   : > { %v529_v17 = vand.u32 4294901760, %v528_v39  ;;  %v1147_v1 = vand.u32 4294901760, %v1146_v46  ;;  %v1874_v43 = vpack.c.bf16 %v2561_v28, %v2540_v48  ;;  %v1876_v20 = vpack.c.bf16 %v2571_v59, %v2566_v57  ;;  %v3069_v12 = vld [vmem:[#allocation12_spill] sm:$0xff]  ;;  %v3070_v39 = vld [vmem:[#allocation14_spill] sm:$0xff]  ;;  %v3071_v46 = vld [vmem:[#allocation15_spill] sm:$0xff] }
  0xf8   : > { %1865 = vmatpush1.bf16.msra.mxu0 %v1864_v47  ;;  %v1962_v37 = vpack.c.bf16 %v2584_v34, %v2577_v27  ;;  %v1878_v42 = vpack.c.bf16 %v2647_v45, %v2637_v11  ;;  %v1880_v47 = vpack.c.bf16 %v2659_v10, %v2654_v52  ;;  %v1965_v24 = vpack.c.bf16 %v2671_v62, %v2664_v51 }
  0xf9   : > { %1954 = vmatpush3.bf16.msra.mxu1 %v1953_v56  ;;  %1867 = vmatprep.subr.bf16.mxu0 %v1866_v35  ;;  %v1882_v44 = vpack.c.bf16 %v2680_v16, %v2688_v19  ;;  %v1884_v56 = vpack.c.bf16 %v2694_v30, %v2692_v40  ;;  %v1968_v36 = vpack.c.bf16 %v2700_v25, %v2696_v15  ;;  %v3067_v35 = vld [vmem:[#allocation10_spill] sm:$0xff] }
  0xfa   : > { %1955 = vmatprep.subr.bf16.mxu1 %v3058_v49 }
  0xfc   : > { %1869 = vmatpush1.bf16.msra.mxu0 %v1868_v58  ;;  %v3072_v58 = vld [vmem:[#allocation16_spill] sm:$0xff] }
  0xfd   : > { %1957 = vmatpush3.bf16.msra.mxu1 %v1956_v14  ;;  %524 = vmatprep.subr.mxu0 %v523_v38  ;;  %v3073_v14 = vand.u32 4294901760, %v2455_v55  ;;  %v3074_v38 = vand.u32 4294901760, %v2491_v3  ;;  %v3080_v3 = vand.u32 4294901760, %v2540_v48  ;;  %v3086_v48 = vand.u32 4294901760, %v2637_v11 }
  0xfe   : > { %1749 = vmatprep.subr.mxu1 %v3052_v54  ;;  %v3092_v11 = vand.u32 4294901760, %v2688_v19 }
 0x100   : > { %530 = vmatpush1.msra.mxu0 %v529_v17  ;;  %v1902_v17 = vpack.c.bf16 %v3074_v38, %v3073_v14 }
 0x101   : > { %1750 = vmatpush3.msra.mxu1 %v1147_v1  ;;  %1871 = vmatprep.subr.bf16.mxu0 %v1870_v26  ;;  %v3075_v1 = vand.u32 4294901760, %v2470_v61  ;;  %v3076_v26 = vand.u32 4294901760, %v2486_v2  ;;  %v3082_v61 = vand.u32 4294901760, %v2566_v57  ;;  %v3088_v57 = vand.u32 4294901760, %v2654_v52 }
 0x102   : > { %1958 = vmatprep.subr.bf16.mxu1 %v3058_v49  ;;  %579 = vmatmul.mubr.f32.vlgmr.msra.gmra.mrb[0].mxu0 %v2481_v7  ;;  %v3094_v52 = vand.u32 4294901760, %v2692_v40 }
 0x103   : > { %1752 = vmatmul.mubr.f32.vlgmr.msra.gmra.mrb[0].mxu1 %v2481_v7  ;;  %1873 = vmatpush1.bf16.msra.mxu0 %v1872_v63  ;;  %v1904_v63 = vpack.c.bf16 %v3076_v26, %v3075_v1 }
 0x104   : > { %1960 = vmatpush3.bf16.msra.mxu1 %v1959_v13  ;;  %1875 = vmatprep.subr.bf16.mxu0 %v1874_v43  ;;  %v3077_v13 = vand.u32 4294901760, %v2467_v60  ;;  %v3078_v43 = vand.u32 4294901760, %v2496_v9  ;;  %v3083_v60 = vand.u32 4294901760, %v2571_v59  ;;  %v3084_v9 = vand.u32 4294901760, %v2577_v27 }
 0x105   : > { %1961 = vmatprep.subr.bf16.mxu1 %v3058_v49  ;;  %685 = vmatprep.mubr.f32.mxu0 %v3052_v54  ;;  %v3089_v59 = vand.u32 4294901760, %v2659_v10  ;;  %v3095_v10 = vand.u32 4294901760, %v2694_v30 }
 0x106   : > { %1772 = vmatprep.mubr.msk.f32.mxu1 %vm2198_vm0, %v3052_v54  ;;  %v1983_v55 = vpack.c.bf16 %v3078_v43, %v3077_v13  ;;  %v1908_v2 = vpack.c.bf16 %v3083_v60, %v3082_v61 }
 0x107   : > { %1877 = vmatpush1.bf16.msra.mxu0 %v1876_v20  ;;  %v3079_v20 = vld [vmem:[#allocation13_spill] sm:$0xff]  ;;  %v1912_v27 = vpack.c.bf16 %v3089_v59, %v3088_v57  ;;  %v1916_v38 = vpack.c.bf16 %v3095_v10, %v3094_v52 }
 0x108   : > { %1963 = vmatpush3.bf16.msra.mxu1 %v1962_v37  ;;  %1879 = vmatprep.subr.bf16.mxu0 %v1878_v42  ;;  %v3081_v37 = vand.u32 4294901760, %v2561_v28  ;;  %v3087_v28 = vand.u32 4294901760, %v2647_v45  ;;  %v3093_v45 = vand.u32 4294901760, %v2680_v16 }
 0x109   : > { %1964 = vmatprep.subr.bf16.mxu1 %v3058_v49 }
 0x10a   : > { %v1906_v42 = vpack.c.bf16 %v3081_v37, %v3080_v3  ;;  %v1914_v14 = vpack.c.bf16 %v3093_v45, %v3092_v11 }
 0x10b   : > { %1881 = vmatpush1.bf16.msra.mxu0 %v1880_v47  ;;  %v3085_v47 = vand.u32 4294901760, %v2584_v34  ;;  %v3090_v34 = vand.u32 4294901760, %v2664_v51  ;;  %v3096_v51 = vand.u32 4294901760, %v2696_v15 }
 0x10c   : > { %1966 = vmatpush3.bf16.msra.mxu1 %v1965_v24  ;;  %1883 = vmatprep.subr.bf16.mxu0 %v1882_v44  ;;  %v1910_v44 = vpack.c.bf16 %v3087_v28, %v3086_v48 }
 0x10d   : > { %1967 = vmatprep.subr.bf16.mxu1 %v3058_v49  ;;  %v1986_v24 = vpack.c.bf16 %v3085_v47, %v3084_v9 }
 0x10f   : > { %1885 = vmatpush1.bf16.msra.mxu0 %v1884_v56  ;;  %v3091_v56 = vand.u32 4294901760, %v2671_v62  ;;  %v3097_v62 = vand.u32 4294901760, %v2700_v25 }
 0x110   : > { %1969 = vmatpush3.bf16.msra.mxu1 %v1968_v36  ;;  %635 = vmatprep.subr.mxu0 %v2737_v29 }
 0x111   : > { %1770 = vmatprep.subr.mxu1 %v3052_v54  ;;  %v1989_v36 = vpack.c.bf16 %v3091_v56, %v3090_v34 }
 0x113   : > { %638 = vmatpush1.msra.mxu0 %v2763_v5 }
 0x114   : > { %1771 = vmatpush3.msra.mxu1 %v2766_v33  ;;  %1887 = vmatprep.subr.bf16.mxu0 %v2383_v21 }
 0x115   : > { %1970 = vmatprep.subr.bf16.mxu1 %v3058_v49  ;;  %688 = vmatmul.mubr.f32.vlgmr.msra.gmra.mrb[0].mxu0 %v2516_v18 }
 0x116   : > { %1773 = vmatmul.mubr.f32.vlgmr.msra.gmra.mrb[0].mxu1 %v2516_v18  ;;  %1889 = vmatpush1.bf16.msra.mxu0 %v2391_v23  ;;  %v3068_v18 = vld [vmem:[#allocation11_spill] sm:$0xff] }
 0x117   : > { %1972 = vmatpush3.bf16.msra.mxu1 %v2387_v22  ;;  %1891 = vmatprep.subr.bf16.mxu0 %v2409_v32 }
 0x118   : > { %1973 = vmatprep.subr.bf16.mxu1 %v3058_v49  ;;  %776 = vmatprep.mubr.f32.mxu0 %v3052_v54 }
 0x119   : > { %1793 = vmatprep.mubr.msk.f32.mxu1 %vm2198_vm0, %v3052_v54 }
 0x11a   : > { %1893 = vmatpush1.bf16.msra.mxu0 %v3065_v6 }
 0x11b   : > { %1975 = vmatpush3.bf16.msra.mxu1 %v3066_v31  ;;  %1895 = vmatprep.subr.bf16.mxu0 %v3067_v35 }
 0x11c   : > { %1976 = vmatprep.subr.bf16.mxu1 %v3058_v49 }
 0x11e   : > { %1897 = vmatpush1.bf16.msra.mxu0 %v3068_v18 }
 0x11f   : > { %1978 = vmatpush3.bf16.msra.mxu1 %v3069_v12  ;;  %1899 = vmatprep.subr.bf16.mxu0 %v3070_v39 }
 0x120   : > { %1979 = vmatprep.subr.bf16.mxu1 %v3058_v49 }
 0x122   : > { %1901 = vmatpush1.bf16.msra.mxu0 %v3071_v46 }
 0x123   : > { %1981 = vmatpush3.bf16.msra.mxu1 %v3072_v58  ;;  %727 = vmatprep.subr.mxu0 %v2682_v0 }
 0x124   : > { %1791 = vmatprep.subr.mxu1 %v3052_v54 }
 0x126   : > { %729 = vmatpush1.msra.mxu0 %v2708_v41 }
 0x127   : > { %1792 = vmatpush3.msra.mxu1 %v2710_v50  ;;  %1903 = vmatprep.subr.bf16.mxu0 %v1902_v17  ;;  %v1992_v17 = vpack.c.bf16 %v3097_v62, %v3096_v51 }
 0x128   : > { %1982 = vmatprep.subr.bf16.mxu1 %v3058_v49  ;;  %780 = vmatmul.mubr.f32.vlgmr.msra.gmra.mrb[0].mxu0 %v3079_v20 }
 0x129   : > { %1794 = vmatmul.mubr.f32.vlgmr.msra.gmra.mrb[0].mxu1 %v3079_v20  ;;  %1905 = vmatpush1.bf16.msra.mxu0 %v1904_v63 }
 0x12a   : > { %1984 = vmatpush3.bf16.msra.mxu1 %v1983_v55  ;;  %1907 = vmatprep.subr.bf16.mxu0 %v1906_v42 }
 0x12b   : > { %1985 = vmatprep.subr.bf16.mxu1 %v3058_v49  ;;  %904 = vmatprep.mubr.f32.mxu0 %v3052_v54 }
 0x12c   : > { %1814 = vmatprep.mubr.msk.f32.mxu1 %vm2198_vm0, %v3052_v54 }
 0x12d   : > { %1909 = vmatpush1.bf16.msra.mxu0 %v1908_v2 }
 0x12e   : > { %1987 = vmatpush3.bf16.msra.mxu1 %v1986_v24  ;;  %1911 = vmatprep.subr.bf16.mxu0 %v1910_v44 }
 0x12f   : > { %1988 = vmatprep.subr.bf16.mxu1 %v3058_v49 }
 0x131   : > { %1913 = vmatpush1.bf16.msra.mxu0 %v1912_v27 }
 0x132   : > { %1990 = vmatpush3.bf16.msra.mxu1 %v1989_v36  ;;  %1915 = vmatprep.subr.bf16.mxu0 %v1914_v14 }
 0x133   : > { %1991 = vmatprep.subr.bf16.mxu1 %v3058_v49 }
 0x135   : > { %1917 = vmatpush1.bf16.msra.mxu0 %v1916_v38 }
 0x136   : > { %1993 = vmatpush3.bf16.msra.mxu1 %v1992_v17  ;;  %853 = vmatprep.subr.mxu0 %v521_v53 }
 0x137   : > { %1812 = vmatprep.subr.mxu1 %v3052_v54 }
 0x139   : > { %857 = vmatpush1.msra.mxu0 %v527_v8 }
 0x13a   : > { %1813 = vmatpush3.msra.mxu1 %v1145_v4  ;;  %1919 = vmatprep.subr.bf16.mxu0 %v2383_v21  ;;  %v323_v21 = vpop.permute.xlu0 %322 }
 0x13b   : > { %1994 = vmatprep.subr.bf16.mxu1 %v3058_v49  ;;  %906 = vmatmul.mubr.f32.vlgmr.msra.gmra.mrb[0].mxu0 %v2481_v7 }
 0x13c   : > { %1815 = vmatmul.mubr.f32.vlgmr.msra.gmra.mrb[0].mxu1 %v2481_v7  ;;  %1921 = vmatpush1.bf16.msra.mxu0 %v2391_v23 }
 0x13d   : > { %1996 = vmatpush3.bf16.msra.mxu1 %v2387_v22  ;;  %1923 = vmatprep.subr.bf16.mxu0 %v2409_v32 }
 0x13e   : > { %1997 = vmatprep.subr.bf16.mxu1 %v3058_v49  ;;  %994 = vmatprep.mubr.f32.mxu0 %v3052_v54 }
 0x13f   : > { %1835 = vmatprep.mubr.msk.f32.mxu1 %vm2198_vm0, %v3052_v54 }
 0x140   : > { %1925 = vmatpush1.bf16.msra.mxu0 %v3065_v6 }
 0x141   : > { %1999 = vmatpush3.bf16.msra.mxu1 %v3066_v31  ;;  %1927 = vmatprep.subr.bf16.mxu0 %v3067_v35 }
 0x142   : > { %2000 = vmatprep.subr.bf16.mxu1 %v3058_v49 }
 0x144   : > { %1929 = vmatpush1.bf16.msra.mxu0 %v3068_v18 }
 0x145   : > { %2002 = vmatpush3.bf16.msra.mxu1 %v3069_v12  ;;  %1931 = vmatprep.subr.bf16.mxu0 %v3070_v39 }
 0x146   : > { %2003 = vmatprep.subr.bf16.mxu1 %v3058_v49 }
 0x148   : > { %1933 = vmatpush1.bf16.msra.mxu0 %v3071_v46 }
 0x149   : > { %2005 = vmatpush3.bf16.msra.mxu1 %v3072_v58  ;;  %945 = vmatprep.subr.mxu0 %v2682_v0 }
 0x14a   : > { %1833 = vmatprep.subr.mxu1 %v3052_v54 }
 0x14c   : > { %947 = vmatpush1.msra.mxu0 %v2708_v41 }
 0x14d   : > { %1834 = vmatpush3.msra.mxu1 %v2710_v50  ;;  %996 = vmatmul.mubr.f32.vlgmr.msra.gmra.mrb[0].mxu0 %v2481_v7 }
 0x14e   : > { %1836 = vmatmul.mubr.f32.vlgmr.msra.gmra.mrb[0].mxu1 %v2481_v7 }
 0x220   : > { %v997_v22 = vpop.f32.mrb[0].mxu0 }
 0x221   : > { %v1548_v23 = vpop.f32.mrb[0].mxu1  ;;  %v2006_v0 = vadd.f32 %v997_v22, %v323_v21  ;;  %v999_v16 = vpop.f32.mrb[1].mxu0 }
 0x222   : > { %v2008_v32 = vadd.f32 %v1548_v23, %v323_v21  ;;  %v1837_v30 = vpop.f32.mrb[1].mxu1  ;;  %v2007_v54 = vadd.f32 %v999_v16, %v323_v21 }
 0x223   : > { %1552 = vst [vmem:[%s186_s30] sm:$0xff] %v2006_v0 }
 0x224   : > { %1554 = vst [vmem:[%s186_s30 + $0x10] sm:$0xff] %v2008_v32  ;;  %1553 = vst [vmem:[%s186_s30 + $0x8] sm:$0xff] %v2007_v54 }
 0x225   : > { %2133 = shalt.err (!%p2130_p4)
}
 0x226   : > { %s2134_s29 = scalar_lea.hbm %s2944_s23, 384  ;;  %s2138_s19 = scalar_lea.hbm %s2991_s3, 768 }
 0x227   : > { %p2135_p5 = scmp.ne.s32.totalorder %s2944_s23, %s2134_s29  ;;  %p2139_p0 = scmp.lt.u32.totalorder %s2944_s23, %s2991_s3 }
 0x228   : > { %p2140_p1 = scmp.lt.u32.totalorder %s2138_s19, %s2134_s29  ;;  %p2142_p6 = scmp.lt.u32.totalorder %s2134_s29, %s2944_s23 }
 0x229   : > { %p2136_p8 = pnand %p2135_p5, %p3098_p11 }
 0x22a   : > { %p2141_p3 = por %p2140_p1, %p2139_p0 }
 0x22b   : > { %p2137_p9 = pneg %p2136_p8 }
 0x22c   : > { %p2143_p12 = por %p2142_p6, %p2141_p3 }
 0x22e   : > { %p2144_p13 = pnand %p2143_p12, %p2137_p9 }
 0x230   : > { %2147 = shalt.err (!%p2144_p13)
}
 0x231   : > { %2033 = dma.vmem_to_hbm [thread:$0]  (%p3098_p11), %s2946_s5, 384, %s2944_s23, %s1556_s16  }
 0x232 PF: > { %s1582_s26 = sand.u32 1, %s2174_s12   ;;  %p3099_p7 = scmp.ne.s32.totalorder %s3035_s25, 0 }
 0x233   : > { %p3100_p10 = scmp.ge.s32.totalorder %s2186_s15, 2  ;;  %s1583_s27 = scalar_lea.sflag [#allocation4], %s1582_s26 }
 0x235   : > { %p2040_p2 = pnand %p3100_p10, %p3099_p7 }
 0x237   : > { %2169 = dma.done.wait (!%p2040_p2), %s1583_s27, 384  }
 0x238   : > { %2171 = vsyncadd (!%p2040_p2), %s1583_s27, 4294966912  ;;  %p16_p4 = scmp.ge.s32.totalorder %s2247_s18, 4   ;;  %s3101_s12 = smov %s2178_s13 }
 0x239   : > { %s3102_s13 = smov %s2182_s14  ;;  %s3103_s14 = smov %s2259_s21 }
 0x23a   : > { %s3104_s15 = smov %s2247_s18  ;;  %18 = sbr.rel (!%p16_p4) target bundleno = 5 (0x5), region = 77 }
 0x241   :  { %1588 = vsyncpa [#allocation3], 1 }
 0x242   :  { %1590 = vsyncpa [#allocation3 + $0x1], 1 }
 0x243   :  { %1591 = vsyncpa [#allocation4], 1 }
 0x244   :  { %1593 = vsyncpa [#allocation4 + $0x1], 1 }

</bundles_post_ra>
